<compile_context>
chip_gen: v7x
topology: tpu7x:2x2x1
jax: 0.10.0
libtpu: 0.0.40
codegen_flags: <defaults>
</compile_context>

<pallas_src>
import functools

import jax
import jax.numpy as jnp
from jax.experimental import pallas as pl
from jax.experimental.pallas import tpu as pltpu

LANES = 128
MAX_BLOCK_ROWS = 4096  # (4096, 128) f32 tile = 2 MiB/buffer -> 8 MiB live, fits every gen


def _round_down(a, b):
    return (a // b) * b


def _sublane_multiple(dtype):
    # Sub-32-bit dtypes pack along sublanes: keep row counts legal (8/16/32).
    itemsize = jnp.dtype(dtype).itemsize
    return max(8, 8 * (4 // max(itemsize, 1)))


def _bce_sum_kernel(logits_ref, labels_ref, out_ref, acc_ref, *,
                    block_rows, tiles_per_split, valid_rows, mask_needed):
    """One (block_rows, 128) tile of elementwise BCE(sigmoid(x), y), folded + accumulated."""
    s = pl.program_id(0)
    i = pl.program_id(1)

    @pl.when(i == 0)
    def _():
        acc_ref[...] = jnp.zeros_like(acc_ref)

    x = logits_ref[...].astype(jnp.float32)
    y = labels_ref[...].astype(jnp.float32)

    # BCE(sigmoid(x), y) with PyTorch's -100 clamp on the log terms, in with-logits form
    # via the softplus identity  softplus(-x) = softplus(x) - x:
    #   -log(sigmoid(x))     = softplus(-x) = sp - x
    #   -log(1 - sigmoid(x)) = softplus( x) = sp
    sp = jnp.maximum(x, 0.0) + jnp.log(1.0 + jnp.exp(-jnp.abs(x)))
    loss = y * jnp.minimum(sp - x, 100.0) + (1.0 - y) * jnp.minimum(sp, 100.0)

    if mask_needed:  # static: only ragged / grid-padded workloads pay for the mask
        row_off = (s * tiles_per_split + i) * block_rows
        row_ids = jax.lax.broadcasted_iota(jnp.int32, (block_rows, LANES), 0) + row_off
        loss = jnp.where(row_ids < valid_rows, loss, 0.0)

    # Tree-fold the tile down to one (8, 128) partial (pure VALU, tile-aligned reshape),
    # then a single small accumulate -> no per-vreg store in the hot loop.
    acc_ref[...] += loss.reshape(block_rows // 8, 8, LANES).sum(axis=0)

    @pl.when(i == pl.num_programs(1) - 1)
    def _():
        out_ref[...] = acc_ref[...]


def _bce_sum_jnp(x, y):
    """Same clamped with-logits BCE, plain jnp, for the tiny unaligned tail."""
    x = x.astype(jnp.float32)
    y = y.astype(jnp.float32)
    sp = jnp.maximum(x, 0.0) + jnp.log(1.0 + jnp.exp(-jnp.abs(x)))
    return jnp.sum(y * jnp.minimum(sp - x, 100.0) + (1.0 - y) * jnp.minimum(sp, 100.0))


def cross_entropy_loss_multilabel(logits, labels):
    """Mean binary cross-entropy of sigmoid(logits) vs labels (any matching size)."""
    assert logits.size == labels.size
    n = int(logits.size)
    if n == 0:
        return jnp.full((), jnp.nan, jnp.float32)  # PyTorch: mean over 0 elements -> nan

    lg = logits.reshape(-1)
    lb = labels.reshape(-1)

    gran = max(_sublane_multiple(logits.dtype), _sublane_multiple(labels.dtype))
    rows = _round_down(n // LANES, gran)   # aligned-prefix rows (multiple of `gran`)
    n_main = rows * LANES

    total = jnp.zeros((), jnp.float32)

    if rows > 0:
        block_rows = min(rows, MAX_BLOCK_ROWS)
        num_tiles = pl.cdiv(rows, block_rows)
        # 2-way split so megacore / multi-TC parts can each stream half the data
        # (no effect on single-core v5e/v6e). No even-tile gate: odd counts get one
        # padded "virtual" tile whose contribution is zeroed by the row mask.
        num_splits = 2 if num_tiles >= 2 else 1
        tiles_per_split = pl.cdiv(num_tiles, num_splits)
        # Grid covers rows beyond the array (ragged last block and/or virtual tile)?
        mask_needed = num_splits * tiles_per_split * block_rows > rows

        # Lane-dense slab in native dtype. Pure (zero-copy) reshape when n is already a
        # multiple of gran*128; otherwise only a prefix slice (no full pad copy).
        lg_m = lg[:n_main].reshape(rows, LANES)
        lb_m = lb[:n_main].reshape(rows, LANES)

        def in_map(s, i):
            # Clamp so padded virtual tiles re-read a valid block (their contribution is
            # zeroed in-kernel); keeps every DMA in bounds.
            return (jnp.minimum(s * tiles_per_split + i, num_tiles - 1), 0)

        kernel = functools.partial(
            _bce_sum_kernel,
            block_rows=block_rows,
            tiles_per_split=tiles_per_split,
            valid_rows=rows,
            mask_needed=mask_needed,
        )

        partials = pl.pallas_call(
            kernel,
            out_shape=jax.ShapeDtypeStruct((num_splits * 8, LANES), jnp.float32),
            grid_spec=pltpu.PrefetchScalarGridSpec(
                num_scalar_prefetch=0,
                grid=(num_splits, tiles_per_split),
                in_specs=[
                    pl.BlockSpec((block_rows, LANES), in_map),
                    pl.BlockSpec((block_rows, LANES), in_map),
                ],
                out_specs=pl.BlockSpec((8, LANES), lambda s, i: (s, 0)),
                scratch_shapes=[pltpu.VMEM((8, LANES), jnp.float32)],
            ),
            compiler_params=pltpu.CompilerParams(
                dimension_semantics=("parallel", "arbitrary"),
                vmem_limit_bytes=32 * 1024 * 1024,
            ),
        )(lg_m, lb_m)

        total = total + jnp.sum(partials)

    if n_main < n:
        # Sub-(gran*128) ragged tail (< 4096 elements): negligible, plain jnp, so the
        # aligned prefix never needs a padding copy.
        total = total + _bce_sum_jnp(lg[n_main:], lb[n_main:])

    return total / n


def _reference(logits, labels):
    p = jax.nn.sigmoid(logits.astype(jnp.float32)).reshape(-1)
    y = labels.astype(jnp.float32).reshape(-1)
    log_p = jnp.maximum(jnp.log(p), -100.0)
    log_1mp = jnp.maximum(jnp.log1p(-p), -100.0)
    return jnp.mean(-(y * log_p + (1.0 - y) * log_1mp))


if __name__ == "__main__":
    key = jax.random.PRNGKey(0)
    k1, k2, k3, k4, k5, k6 = jax.random.split(key, 6)

    # NCHW-style logits with soft multi-labels in [0, 1] of the same shape.
    logits = jax.random.normal(k1, (2, 4, 16, 16), dtype=jnp.float32)
    labels = jax.random.uniform(k2, (2, 4, 16, 16), dtype=jnp.float32)
    loss = jax.block_until_ready(cross_entropy_loss_multilabel(logits, labels))
    ref = _reference(logits, labels)
    assert jnp.allclose(loss, ref, atol=1e-5, rtol=1e-5), (loss, ref)

    # Tiny ragged size (< one 8x128 row group): exercises the jnp tail path.
    logits2 = 3.0 * jax.random.normal(k3, (3, 5, 7), dtype=jnp.float32)
    labels2 = jax.random.uniform(k4, (3, 5, 7), dtype=jnp.float32)
    loss2 = jax.block_until_ready(cross_entropy_loss_multilabel(logits2, labels2))
    ref2 = _reference(logits2, labels2)
    assert jnp.allclose(loss2, ref2, atol=1e-5, rtol=1e-5), (loss2, ref2)

    # Larger ragged size: multi-tile grid, 2-way split with a clamped virtual tile,
    # ragged last block (in-kernel row mask) and a wrapper-side tail.
    logits3 = 2.0 * jax.random.normal(k5, (1_100_003,), dtype=jnp.float32)
    labels3 = jax.random.uniform(k6, (1_100_003,), dtype=jnp.float32)
    loss3 = jax.block_until_ready(cross_entropy_loss_multilabel(logits3, labels3))
    ref3 = _reference(logits3, labels3)
    assert jnp.allclose(loss3, ref3, atol=1e-5, rtol=1e-4), (loss3, ref3)

    print("KERNEL_OK")
</pallas_src>

<mosaic_0001>
module attributes {stable_mosaic.version = 11 : i64} {
  func.func @_bce_sum_kernel(%arg0: i32, %arg1: i32, %arg2: memref<16x128xf32, #tpu.memory_space<vmem>>, %arg3: memref<16x128xf32, #tpu.memory_space<vmem>>, %arg4: memref<8x128xf32, #tpu.memory_space<vmem>>, %arg5: memref<8x128xf32, #tpu.memory_space<vmem>>) attributes {dimension_semantics = [#tpu.dimension_semantics<parallel>, #tpu.dimension_semantics<arbitrary>], iteration_bounds = array<i64: 1, 1>, scalar_prefetch = 0 : i64, scratch_operands = 1 : i64, tpu.core_type = #tpu.core_type<tc>, window_params = [{transform_indices = @transform_0, window_bounds = array<i64: 16, 128>}, {transform_indices = @transform_1, window_bounds = array<i64: 16, 128>}, {transform_indices = @transform_2, window_bounds = array<i64: 8, 128>}]} {
    %c0_i32 = arith.constant 0 : i32
    %0 = arith.cmpi eq, %arg1, %c0_i32 : i32
    %1 = arith.extui %0 : i1 to i32
    %c0_i32_0 = arith.constant 0 : i32
    %2 = arith.cmpi ne, %1, %c0_i32_0 : i32
    scf.if %2 {
      %cst_16 = arith.constant 0.000000e+00 : f32
      %33 = vector.broadcast %cst_16 : f32 to vector<8x128xf32>
      %c0_17 = arith.constant 0 : index
      %c0_18 = arith.constant 0 : index
      %34 = vector.load %arg5[%c0_17, %c0_18] : memref<8x128xf32, #tpu.memory_space<vmem>>, vector<8x128xf32>
      tpu.vector_store %arg5[%c0_17, %c0_18], %33 {strides = array<i32>} : memref<8x128xf32, #tpu.memory_space<vmem>>, vector<8x128xf32>,
    } else {
    }
    %c0 = arith.constant 0 : index
    %c0_1 = arith.constant 0 : index
    %3 = vector.load %arg2[%c0, %c0_1] : memref<16x128xf32, #tpu.memory_space<vmem>>, vector<16x128xf32>
    %c0_2 = arith.constant 0 : index
    %c0_3 = arith.constant 0 : index
    %4 = vector.load %arg3[%c0_2, %c0_3] : memref<16x128xf32, #tpu.memory_space<vmem>>, vector<16x128xf32>
    %cst = arith.constant 0.000000e+00 : f32
    %5 = vector.broadcast %cst : f32 to vector<16x128xf32>
    %6 = arith.maximumf %3, %5 : vector<16x128xf32>
    %7 = math.absf %3 : vector<16x128xf32>
    %cst_4 = arith.constant 0.000000e+00 : f32
    %8 = vector.broadcast %cst_4 : f32 to vector<16x128xf32>
    %9 = arith.subf %8, %7 : vector<16x128xf32>
    %10 = math.exp %9 : vector<16x128xf32>
    %cst_5 = arith.constant 1.000000e+00 : f32
    %11 = vector.broadcast %cst_5 : f32 to vector<16x128xf32>
    %12 = arith.addf %11, %10 : vector<16x128xf32>
    %13 = math.log %12 : vector<16x128xf32>
    %14 = arith.addf %6, %13 : vector<16x128xf32>
    %15 = arith.subf %14, %3 : vector<16x128xf32>
    %cst_6 = arith.constant 1.000000e+02 : f32
    %16 = vector.broadcast %cst_6 : f32 to vector<16x128xf32>
    %17 = arith.minimumf %15, %16 : vector<16x128xf32>
    %18 = arith.mulf %4, %17 : vector<16x128xf32>
    %cst_7 = arith.constant 1.000000e+00 : f32
    %19 = vector.broadcast %cst_7 : f32 to vector<16x128xf32>
    %20 = arith.subf %19, %4 : vector<16x128xf32>
    %cst_8 = arith.constant 1.000000e+02 : f32
    %21 = vector.broadcast %cst_8 : f32 to vector<16x128xf32>
    %22 = arith.minimumf %14, %21 : vector<16x128xf32>
    %23 = arith.mulf %20, %22 : vector<16x128xf32>
    %24 = arith.addf %18, %23 : vector<16x128xf32>
    %c0_9 = arith.constant 0 : index
    %c0_10 = arith.constant 0 : index
    %25 = vector.load %arg5[%c0_9, %c0_10] : memref<8x128xf32, #tpu.memory_space<vmem>>, vector<8x128xf32>
    %26 = vector.shape_cast %24 : vector<16x128xf32> to vector<2x8x128xf32>
    %cst_11 = arith.constant dense<0.000000e+00> : vector<8x128xf32>
    %27 = vector.multi_reduction <add>, %26, %cst_11 [0] : vector<2x8x128xf32> to vector<8x128xf32>
    %28 = arith.addf %25, %27 : vector<8x128xf32>
    %c0_12 = arith.constant 0 : index
    %c0_13 = arith.constant 0 : index
    %29 = vector.load %arg5[%c0_12, %c0_13] : memref<8x128xf32, #tpu.memory_space<vmem>>, vector<8x128xf32>
    tpu.vector_store %arg5[%c0_12, %c0_13], %28 {strides = array<i32>} : memref<8x128xf32, #tpu.memory_space<vmem>>, vector<8x128xf32>,
    %c0_i32_14 = arith.constant 0 : i32
    %30 = arith.cmpi eq, %arg1, %c0_i32_14 : i32
    %31 = arith.extui %30 : i1 to i32
    %c0_i32_15 = arith.constant 0 : i32
    %32 = arith.cmpi ne, %31, %c0_i32_15 : i32
    scf.if %32 {
      %c0_16 = arith.constant 0 : index
      %c0_17 = arith.constant 0 : index
      %33 = vector.load %arg5[%c0_16, %c0_17] : memref<8x128xf32, #tpu.memory_space<vmem>>, vector<8x128xf32>
      %c0_18 = arith.constant 0 : index
      %c0_19 = arith.constant 0 : index
      %34 = vector.load %arg4[%c0_18, %c0_19] : memref<8x128xf32, #tpu.memory_space<vmem>>, vector<8x128xf32>
      tpu.vector_store %arg4[%c0_18, %c0_19], %33 {strides = array<i32>} : memref<8x128xf32, #tpu.memory_space<vmem>>, vector<8x128xf32>,
    } else {
    }
    return
  }
  func.func @transform_0(%arg0: i32, %arg1: i32) -> (i32, i32) {
    %c1_i32 = arith.constant 1 : i32
    %0 = arith.muli %arg0, %c1_i32 : i32
    %1 = arith.addi %0, %arg1 : i32
    %c0_i32 = arith.constant 0 : i32
    %2 = arith.minsi %1, %c0_i32 : i32
    %c0_i32_0 = arith.constant 0 : i32
    %c0_i32_1 = arith.constant 0 : i32
    return %2, %c0_i32_0 : i32, i32
  }
  func.func @transform_1(%arg0: i32, %arg1: i32) -> (i32, i32) {
    %c1_i32 = arith.constant 1 : i32
    %0 = arith.muli %arg0, %c1_i32 : i32
    %1 = arith.addi %0, %arg1 : i32
    %c0_i32 = arith.constant 0 : i32
    %2 = arith.minsi %1, %c0_i32 : i32
    %c0_i32_0 = arith.constant 0 : i32
    %c0_i32_1 = arith.constant 0 : i32
    return %2, %c0_i32_0 : i32, i32
  }
  func.func @transform_2(%arg0: i32, %arg1: i32) -> (i32, i32) {
    %c0_i32 = arith.constant 0 : i32
    %c0_i32_0 = arith.constant 0 : i32
    return %arg0, %c0_i32 : i32, i32
  }
}

</mosaic_0001>

<bundles_post_ra>
// kernel: tpu_custom_call.1
= control target key start
LH: loop header
LB: loop body
LE: loop exit
PB: predicated region body
PF: predicated region fallthrough
CT: control target
= control target key end

     0   :  { %7 = vsyncpa [#allocation4], 0  ;;  %s271_s0 = inlined_call_operand.hbm [shape: f32[16,128], index: 0, kind: input, shape index: {}]   ;;  %s272_s1 = inlined_call_operand.hbm [shape: f32[16,128], index: 1, kind: input, shape index: {}]   ;;  %s273_s2 = inlined_call_operand.hbm [shape: f32[8,128], index: 2, kind: output, shape index: {}]  }
   0x1   :  { %8 = vsyncpa [#allocation7], 0 }
   0x2   :  { %9 = vsyncpa [#allocation5], 0  ;;  %s215_s9 = smov [#allocation3]   ;;  %s143_s13 = scalar_lea.hbm %s271_s0, 256 }
   0x3   :  { %s21_s10 = sshll.u32 %s215_s9, 4  ;;  %p144_p0 = scmp.ne.s32.totalorder %s271_s0, %s143_s13  ;;  %s22_s10 = int_to_ptr.vmem [resolvable:$true] %s21_s10 }
   0x4   :  { %p147_p1 = scmp.lt.u32.totalorder %s143_s13, %s271_s0 }
   0x6   :  { %p149_p2 = pnand %p147_p1, %p144_p0 }
   0x8   :  { %152 = shalt.err (!%p149_p2)
}
   0x9   :  { %s153_s18 = scalar_lea.vmem %s22_s10, 256  ;;  %p158_p4 = scmp.lt.s32.totalorder %s22_s10, %s22_s10 }
   0xa   :  { %p154_p3 = scmp.ne.s32.totalorder %s22_s10, %s153_s18  ;;  %p159_p5 = scmp.lt.s32.totalorder %s153_s18, %s153_s18 }
   0xc   :  { %p160_p6 = por %p159_p5, %p158_p4 }
   0xe   :  { %p161_p7 = pnand %p160_p6, %p154_p3 }
  0x10   :  { %164 = shalt.err (!%p161_p7)
}
  0x11   :  { %s216_s19 = smov 128   ;;  %s217_s20 = smov 8  }
  0x12   :  { %27 = dma.hbm_to_vmem [thread:$0]  %s271_s0, 256, %s22_s10, [#allocation4], %s216_s19, %s216_s19, %s217_s20  }
  0x13   :  { %s218_s23 = smov [#allocation6]   ;;  %s165_s27 = scalar_lea.hbm %s272_s1, 256 }
  0x14   :  { %s39_s24 = sshll.u32 %s218_s23, 4  ;;  %p166_p8 = scmp.ne.s32.totalorder %s272_s1, %s165_s27  ;;  %s40_s24 = int_to_ptr.vmem [resolvable:$true] %s39_s24 }
  0x15   :  { %p169_p9 = scmp.lt.u32.totalorder %s165_s27, %s272_s1 }
  0x17   :  { %p171_p10 = pnand %p169_p9, %p166_p8 }
  0x19   :  { %174 = shalt.err (!%p171_p10)
}
  0x1a   :  { %s175_s4 = scalar_lea.vmem %s40_s24, 256  ;;  %p180_p12 = scmp.lt.s32.totalorder %s40_s24, %s40_s24 }
  0x1b   :  { %p176_p11 = scmp.ne.s32.totalorder %s40_s24, %s175_s4  ;;  %p181_p13 = scmp.lt.s32.totalorder %s175_s4, %s175_s4 }
  0x1d   :  { %p182_p0 = por %p181_p13, %p180_p12 }
  0x1f   :  { %p183_p1 = pnand %p182_p0, %p176_p11 }
  0x21   :  { %186 = shalt.err (!%p183_p1)
}
  0x22   :  { %45 = dma.hbm_to_vmem [thread:$0]  %s272_s1, 256, %s40_s24, [#allocation7], %s216_s19, %s216_s19, %s217_s20  }
  0x23   :  { %209 = dma.done.wait [#allocation4], 256  }
  0x24   :  { %210 = vsyncadd [#allocation4], 4294967040 }
  0x25   :  { %211 = dma.done.wait [#allocation7], 256  }
  0x26   :  { %212 = vsyncadd [#allocation7], 4294967040  ;;  %v65_v0 = vld [vmem:[#allocation3] sm:$0xff]  ;;  %v66_v1 = vld [vmem:[#allocation3 + $0x8] sm:$0xff]  ;;  %s219_s1 = smov [#allocation8]  }
  0x27   :  { %v71_v2 = vand.u32 2147483647, %v65_v0  ;;  %v72_v3 = vand.u32 2147483647, %v66_v1  ;;  %v69_v12 = vmax.f32 %v65_v0, 0.0  ;;  %v67_v14 = vld [vmem:[#allocation6] sm:$0xff] }
  0x28   :  { %v70_v15 = vmax.f32 %v66_v1, 0.0  ;;  %v68_v17 = vld [vmem:[#allocation6 + $0x8] sm:$0xff]  ;;  %v93_v21 = vsub.f32 1.0, %v67_v14  ;;  %s116_s6 = sshll.u32 %s219_s1, 4  ;;  %s117_s6 = int_to_ptr.vmem [resolvable:$true] %s116_s6 }
  0x29   :  { %v73_v4 = vsub.f32 0.0, %v71_v2  ;;  %v74_v5 = vsub.f32 0.0, %v72_v3  ;;  %v94_v23 = vsub.f32 1.0, %v68_v17  ;;  %s187_s7 = scalar_lea.vmem %s117_s6, 128  ;;  %p192_p3 = scmp.lt.s32.totalorder %s117_s6, %s117_s6 }
  0x2a   :  { %p188_p2 = scmp.ne.s32.totalorder %s117_s6, %s187_s7  ;;  %p193_p4 = scmp.lt.s32.totalorder %s187_s7, %s187_s7 }
  0x2b   :  { %v75_v6 = vmul.f32 1.442695, %v73_v4  ;;  %v77_v7 = vmul.f32 1.442695, %v74_v5 }
  0x2c   :  { %p194_p5 = por %p193_p4, %p192_p3 }
  0x2d   :  { %135 = vpow2.f32 %v75_v6 }
  0x2e   :  { %137 = vpow2.f32 %v77_v7  ;;  %p195_p6 = pnand %p194_p5, %p188_p2 }
  0x37   :  { %v136_v8 = vpop.eup %135 }
  0x38   :  { %v138_v9 = vpop.eup %137  ;;  %v79_v10 = vadd.f32 1.0, %v136_v8 }
  0x39   :  { %v80_v11 = vadd.f32 1.0, %v138_v9 }
  0x3a   :  { %139 = vlog2.f32 %v79_v10 }
  0x3b   :  { %141 = vlog2.f32 %v80_v11 }
  0x44   :  { %v140_v13 = vpop.eup %139 }
  0x45   :  { %v142_v16 = vpop.eup %141  ;;  %v82_v18 = vmul.f32 0.6931472, %v140_v13 }
  0x46   :  { %v84_v19 = vmul.f32 0.6931472, %v142_v16 }
  0x47   :  { %v85_v20 = vadd.f32 %v82_v18, %v69_v12 }
  0x48   :  { %v86_v22 = vadd.f32 %v84_v19, %v70_v15 }
  0x49   :  { %v87_v24 = vsub.f32 %v85_v20, %v65_v0  ;;  %v95_v25 = vmin.f32 %v85_v20, 100.0 }
  0x4a   :  { %v88_v26 = vsub.f32 %v86_v22, %v66_v1  ;;  %v96_v27 = vmin.f32 %v86_v22, 100.0 }
  0x4b   :  { %v89_v28 = vmin.f32 %v87_v24, 100.0  ;;  %v97_v29 = vmul.f32 %v95_v25, %v93_v21 }
  0x4c   :  { %v90_v30 = vmin.f32 %v88_v26, 100.0  ;;  %v98_v31 = vmul.f32 %v96_v27, %v94_v23 }
  0x4d   :  { %v91_v32 = vmul.f32 %v89_v28, %v67_v14 }
  0x4e   :  { %v92_v33 = vmul.f32 %v90_v30, %v68_v17 }
  0x4f   :  { %v99_v34 = vadd.f32 %v97_v29, %v91_v32 }
  0x50   :  { %v100_v35 = vadd.f32 %v98_v31, %v92_v33 }
  0x52   :  { %v102_v36 = vadd.f32 %v100_v35, %v99_v34 }
  0x54   :  { %109 = vst [vmem:[#allocation8] sm:$0xff] %v102_v36 }
  0x55   :  { %198 = shalt.err (!%p195_p6)
}
  0x56   :  { %s199_s10 = scalar_lea.hbm %s273_s2, 128 }
  0x57   :  { %p200_p7 = scmp.ne.s32.totalorder %s273_s2, %s199_s10  ;;  %p203_p8 = scmp.lt.u32.totalorder %s199_s10, %s273_s2 }
  0x59   :  { %p205_p9 = pnand %p203_p8, %p200_p7 }
  0x5b   :  { %208 = shalt.err (!%p205_p9)
}
  0x5c   :  { %119 = dma.vmem_to_hbm [thread:$0]  %s117_s6, 128, %s273_s2, [#allocation5]  }
  0x5d   :  { %213 = dma.done.wait [#allocation5], 128  }
  0x5e   :  { %214 = vsyncadd [#allocation5], 4294967168 }
  0x5f   :  { %123 = vsyncpa [#allocation4], 1 }
  0x60   :  { %124 = vsyncpa [#allocation7], 1 }
  0x61   :  { %125 = vsyncpa [#allocation5], 1 }

</bundles_post_ra>
